<compile_context>
chip_gen: v6e
topology: v6e:2x2x1
jax: 0.10.0
libtpu: 0.0.40
codegen_flags: <defaults>
</compile_context>

<pallas_src>
import functools

import jax
import jax.numpy as jnp
from jax.experimental import pallas as pl
from jax.experimental.pallas import tpu as pltpu


# ----------------------------- Pallas kernels ------------------------------ #

def _fused_conv_bn_kernel(w_ref, p_ref, gamma_ref, beta_ref, o_ref, *,
                          inv_m, hw, eps):
    """Single-shot conv matmul + training-mode BN, fully resident in VMEM.

    w_ref: (C_out, K)  p_ref: (K, M) with M = N*Ho*Wo, columns (n, ho, wo)-ordered
    gamma_ref / beta_ref: (C_out, 1)    o_ref: (N, C_out, Ho*Wo)
    """
    y = jnp.dot(w_ref[...], p_ref[...], preferred_element_type=jnp.float32)
    mean = jnp.sum(y, axis=1, keepdims=True) * inv_m            # (C_out, 1)
    d = y - mean
    var = jnp.sum(d * d, axis=1, keepdims=True) * inv_m         # centered -> stable
    scale = gamma_ref[...] * jax.lax.rsqrt(var + eps)           # EUP rsqrt
    ynorm = d * scale + beta_ref[...]                           # (C_out, M)
    # Each image is a contiguous, lane-aligned slab of hw columns: write the
    # NCHW-ordered output directly (no epilogue transpose pass needed).
    n_img = o_ref.shape[0]
    for i in range(n_img):
        o_ref[i, :, :] = ynorm[:, i * hw:(i + 1) * hw]


def _conv_stats_kernel(w_ref, p_ref, y_ref, sum_ref, ssq_ref):
    # w_ref: (C_out, K_pad)   p_ref: (K_pad, tm)   y_ref: (C_out, tm)
    # sum_ref / ssq_ref: (1, C_out, 1) per-tile partial BN statistics.
    acc = jnp.dot(w_ref[...], p_ref[...], preferred_element_type=jnp.float32)
    y_ref[...] = acc
    sum_ref[0] = jnp.sum(acc, axis=1, keepdims=True)            # (C_out, 1)
    ssq_ref[0] = jnp.sum(acc * acc, axis=1, keepdims=True)      # (C_out, 1)


def _bn_apply_kernel(y_ref, tsum_ref, tssq_ref, gamma_ref, beta_ref, o_ref, *,
                     inv_m, eps):
    # Per-channel scale/shift computed in-kernel (replaces the tiny XLA ops
    # that previously sat between the two pallas_calls).
    mean = tsum_ref[...] * inv_m                                # (C_out, 1)
    # Note: E[x^2]-E[x]^2 in f32; clamped to avoid tiny negative values.
    var = jnp.maximum(tssq_ref[...] * inv_m - mean * mean, 0.0)
    scale = gamma_ref[...] * jax.lax.rsqrt(var + eps)
    shift = beta_ref[...] - mean * scale
    o_ref[...] = y_ref[...] * scale + shift


# ------------------------------ JAX glue code ------------------------------ #

def _round_up(a, b):
    return ((a + b - 1) // b) * b


def _im2col_t(x, k, stride, pad):
    """x: (N, C, H, W) -> transposed patches (C*k*k, N*Ho*Wo).

    Row ordering matches PyTorch's weight.reshape(C_out, C_in*k*k)
    (channel-major, then kh, kw); columns are (n, ho, wo) row-major."""
    n, c, h, w = x.shape
    xp = jnp.pad(x, ((0, 0), (0, 0), (pad, pad), (pad, pad)))
    ho = (h + 2 * pad - k) // stride + 1
    wo = (w + 2 * pad - k) // stride + 1
    cols = []
    for i in range(k):
        for j in range(k):
            cols.append(xp[:, :, i:i + stride * ho:stride, j:j + stride * wo:stride])
    patches = jnp.stack(cols, axis=2)                       # (N, C, k*k, Ho, Wo)
    patches = patches.transpose(1, 2, 0, 3, 4)              # (C, k*k, N, Ho, Wo)
    patches_t = patches.reshape(c * k * k, n * ho * wo)     # (K, M)
    return patches_t, ho, wo


def conv2d_batchnorm(x, weight, bias, gamma, beta, *, stride, padding,
                     eps=1e-5, tm=1024):
    """x: (N, C_in, H, W) NCHW. weight: (C_out, C_in, k, k). Returns NCHW.

    `bias` is accepted for API parity with the PyTorch module but is not added:
    training-mode BatchNorm subtracts the per-channel batch mean, which exactly
    cancels any per-channel constant added by the conv bias."""
    del bias
    n, c_in, h, w = x.shape
    c_out, _, k, _ = weight.shape

    patches_t, ho, wo = _im2col_t(x, k, stride, padding)     # (K, M)
    kd, m = patches_t.shape
    hw = ho * wo

    gamma2d = gamma.reshape(c_out, 1).astype(jnp.float32)
    beta2d = beta.reshape(c_out, 1).astype(jnp.float32)
    w2d = weight.reshape(c_out, kd).astype(jnp.float32)

    # ----------------- Fused single-kernel path (fits in VMEM) -------------
    # Rough VMEM footprint: patches + weights + y + normalized y + output.
    fused_bytes = 4 * (kd * m + c_out * kd + 2 * c_out * m + n * c_out * hw)
    if hw % 128 == 0 and fused_bytes <= 16 * 1024 * 1024:
        out3 = pl.pallas_call(
            functools.partial(_fused_conv_bn_kernel,
                              inv_m=1.0 / float(m), hw=hw, eps=eps),
            out_shape=jax.ShapeDtypeStruct((n, c_out, hw), jnp.float32),
            compiler_params=pltpu.CompilerParams(
                vmem_limit_bytes=32 * 1024 * 1024),
        )(w2d, patches_t, gamma2d, beta2d)
        return out3.reshape(n, c_out, ho, wo)   # free reshape, no transpose

    # ----------------- Two-pass tiled fallback (large M) -------------------
    # Pad K to a sublane multiple; tile M lane-dense.
    k_pad = _round_up(kd, 8)
    tm_eff = min(tm, _round_up(m, 128))
    if m > 128:
        # v7x megacore: prefer at least two M tiles so both TCs get work.
        tm_eff = min(tm_eff, _round_up((m + 1) // 2, 128))
    # Keep the double-buffered per-step footprint well inside the 32 MiB
    # scoped-VMEM limit (v7x has only 64 MiB physical VMEM).
    while tm_eff > 128 and 2 * (k_pad + 2 * c_out) * tm_eff * 4 > 12 * 1024 * 1024:
        tm_eff = max(128, _round_up(tm_eff // 2, 128))
    m_pad = _round_up(m, tm_eff)
    g = m_pad // tm_eff

    # Zero padding: padded K rows multiply zero weights; padded M columns
    # produce exact zeros and so do not perturb the batch statistics.
    patches_p = patches_t
    if k_pad != kd or m_pad != m:
        patches_p = jnp.pad(patches_t, ((0, k_pad - kd), (0, m_pad - m)))
    w2d_p = jnp.pad(w2d, ((0, 0), (0, k_pad - kd))) if k_pad != kd else w2d

    cparams = pltpu.CompilerParams(
        dimension_semantics=("parallel",),
        vmem_limit_bytes=32 * 1024 * 1024,
    )

    # Pass 1: conv matmul (lane-dense output) + fused per-tile BN stats.
    y, psum, pssq = pl.pallas_call(
        _conv_stats_kernel,
        out_shape=(
            jax.ShapeDtypeStruct((c_out, m_pad), jnp.float32),
            jax.ShapeDtypeStruct((g, c_out, 1), jnp.float32),
            jax.ShapeDtypeStruct((g, c_out, 1), jnp.float32),
        ),
        grid=(g,),
        in_specs=[
            pl.BlockSpec((c_out, k_pad), lambda i: (0, 0)),
            pl.BlockSpec((k_pad, tm_eff), lambda i: (0, i)),
        ],
        out_specs=(
            pl.BlockSpec((c_out, tm_eff), lambda i: (0, i)),
            pl.BlockSpec((1, c_out, 1), lambda i: (i, 0, 0)),
            pl.BlockSpec((1, c_out, 1), lambda i: (i, 0, 0)),
        ),
        compiler_params=cparams,
    )(w2d_p, patches_p)

    # Only two tiny (g, C_out) reductions happen in XLA; everything else
    # (mean/var/rsqrt/scale/shift) is computed inside pass 2.
    tsum = jnp.sum(psum, axis=0)          # (C_out, 1)
    tssq = jnp.sum(pssq, axis=0)          # (C_out, 1)

    out_t = pl.pallas_call(
        functools.partial(_bn_apply_kernel, inv_m=1.0 / float(m), eps=eps),
        out_shape=jax.ShapeDtypeStruct((c_out, m_pad), jnp.float32),
        grid=(g,),
        in_specs=[
            pl.BlockSpec((c_out, tm_eff), lambda i: (0, i)),
            pl.BlockSpec((c_out, 1), lambda i: (0, 0)),
            pl.BlockSpec((c_out, 1), lambda i: (0, 0)),
            pl.BlockSpec((c_out, 1), lambda i: (0, 0)),
            pl.BlockSpec((c_out, 1), lambda i: (0, 0)),
        ],
        out_specs=pl.BlockSpec((c_out, tm_eff), lambda i: (0, i)),
        compiler_params=cparams,
    )(y, tsum, tssq, gamma2d, beta2d)

    # TODO(synk): when Ho*Wo is lane-aligned, tile pass 2 per image and write
    #             (N, C_out, Ho*Wo) directly to drop this epilogue pass too.
    out = out_t[:, :m].reshape(c_out, n, ho, wo).transpose(1, 0, 2, 3)
    return out


# ------------------------------ reference impl ----------------------------- #

def _reference(x, weight, bias, gamma, beta, *, stride, padding, eps=1e-5):
    y = jax.lax.conv_general_dilated(
        x, weight, window_strides=(stride, stride),
        padding=((padding, padding), (padding, padding)),
        dimension_numbers=("NCHW", "OIHW", "NCHW"))
    y = y + bias.reshape(1, -1, 1, 1)
    mean = jnp.mean(y, axis=(0, 2, 3), keepdims=True)
    var = jnp.mean((y - mean) ** 2, axis=(0, 2, 3), keepdims=True)
    return (y - mean) * jax.lax.rsqrt(var + eps) * gamma.reshape(1, -1, 1, 1) \
        + beta.reshape(1, -1, 1, 1)


# ---------------------------------- main ----------------------------------- #

if __name__ == "__main__":
    # conv2DBatchNorm(in_channels=4, n_filters=8, k_size=3, stride=1, padding=1,
    #                 bias=True, dilation=1, is_batchnorm=True)
    N, C_IN, H, W = 2, 4, 16, 16
    C_OUT, K, STRIDE, PAD = 8, 3, 1, 1

    key = jax.random.PRNGKey(0)
    kx, kw, kb, kg, kbt = jax.random.split(key, 5)
    x = jax.random.normal(kx, (N, C_IN, H, W), dtype=jnp.float32)
    weight = jax.random.normal(kw, (C_OUT, C_IN, K, K), dtype=jnp.float32) * 0.1
    bias = jax.random.normal(kb, (C_OUT,), dtype=jnp.float32) * 0.1
    gamma = 1.0 + 0.1 * jax.random.normal(kg, (C_OUT,), dtype=jnp.float32)
    beta = 0.1 * jax.random.normal(kbt, (C_OUT,), dtype=jnp.float32)

    fn = jax.jit(functools.partial(conv2d_batchnorm, stride=STRIDE, padding=PAD))
    out = fn(x, weight, bias, gamma, beta)
    out = jax.block_until_ready(out)

    ref = _reference(x, weight, bias, gamma, beta, stride=STRIDE, padding=PAD)
    assert out.shape == (N, C_OUT, H, W)
    assert jnp.allclose(out, ref, atol=1e-4, rtol=1e-4)

    print("KERNEL_OK")
</pallas_src>

<mosaic_0001>
module attributes {stable_mosaic.version = 11 : i64} {
  func.func @_fused_conv_bn_kernel(%arg0: memref<8x36xf32, #tpu.memory_space<vmem>>, %arg1: memref<36x512xf32, #tpu.memory_space<vmem>>, %arg2: memref<8x1xf32, #tpu.memory_space<vmem>>, %arg3: memref<8x1xf32, #tpu.memory_space<vmem>>, %arg4: memref<2x8x256xf32, #tpu.memory_space<vmem>>) attributes {dimension_semantics = [], scalar_prefetch = 0 : i64, scratch_operands = 0 : i64, tpu.core_type = #tpu.core_type<tc>} {
    %c0 = arith.constant 0 : index
    %c0_0 = arith.constant 0 : index
    %0 = vector.load %arg0[%c0, %c0_0] : memref<8x36xf32, #tpu.memory_space<vmem>>, vector<8x36xf32>
    %c0_1 = arith.constant 0 : index
    %c0_2 = arith.constant 0 : index
    %1 = vector.load %arg1[%c0_1, %c0_2] : memref<36x512xf32, #tpu.memory_space<vmem>>, vector<36x512xf32>
    %cst = arith.constant dense<0.000000e+00> : vector<8x512xf32>
    %2 = tpu.matmul %0, %1, %cst {dimension_numbers = #tpu.dot_dimension_numbers<[1], [0], [0], [1], [0, 0, 1, 1], [], []>} : vector<8x36xf32>, vector<36x512xf32>, vector<8x512xf32> -> vector<8x512xf32>
    %cst_3 = arith.constant dense<0.000000e+00> : vector<8xf32>
    %3 = vector.multi_reduction <add>, %2, %cst_3 [1] : vector<8x512xf32> to vector<8xf32>
    %4 = vector.shape_cast %3 : vector<8xf32> to vector<8x1xf32>
    %cst_4 = arith.constant 0.001953125 : f32
    %5 = vector.broadcast %cst_4 : f32 to vector<8x1xf32>
    %6 = arith.mulf %4, %5 : vector<8x1xf32>
    %7 = vector.broadcast %6 : vector<8x1xf32> to vector<8x512xf32>
    %8 = arith.subf %2, %7 : vector<8x512xf32>
    %9 = arith.mulf %8, %8 : vector<8x512xf32>
    %cst_5 = arith.constant dense<0.000000e+00> : vector<8xf32>
    %10 = vector.multi_reduction <add>, %9, %cst_5 [1] : vector<8x512xf32> to vector<8xf32>
    %11 = vector.shape_cast %10 : vector<8xf32> to vector<8x1xf32>
    %cst_6 = arith.constant 0.001953125 : f32
    %12 = vector.broadcast %cst_6 : f32 to vector<8x1xf32>
    %13 = arith.mulf %11, %12 : vector<8x1xf32>
    %c0_7 = arith.constant 0 : index
    %c0_8 = arith.constant 0 : index
    %14 = vector.load %arg2[%c0_7, %c0_8] : memref<8x1xf32, #tpu.memory_space<vmem>>, vector<8x1xf32>
    %cst_9 = arith.constant 9.99999974E-6 : f32
    %15 = vector.broadcast %cst_9 : f32 to vector<8x1xf32>
    %16 = arith.addf %13, %15 : vector<8x1xf32>
    %17 = math.rsqrt %16 : vector<8x1xf32>
    %18 = arith.mulf %14, %17 : vector<8x1xf32>
    %19 = vector.broadcast %18 : vector<8x1xf32> to vector<8x512xf32>
    %20 = arith.mulf %8, %19 : vector<8x512xf32>
    %c0_10 = arith.constant 0 : index
    %c0_11 = arith.constant 0 : index
    %21 = vector.load %arg3[%c0_10, %c0_11] : memref<8x1xf32, #tpu.memory_space<vmem>>, vector<8x1xf32>
    %22 = vector.broadcast %21 : vector<8x1xf32> to vector<8x512xf32>
    %23 = arith.addf %20, %22 : vector<8x512xf32>
    %24 = vector.extract_strided_slice %23 {offsets = [0, 0], sizes = [8, 256], strides = [1, 1]} : vector<8x512xf32> to vector<8x256xf32>
    %c0_12 = arith.constant 0 : index
    %c0_13 = arith.constant 0 : index
    %c0_14 = arith.constant 0 : index
    %25 = vector.load %arg4[%c0_12, %c0_13, %c0_14] : memref<2x8x256xf32, #tpu.memory_space<vmem>>, vector<1x8x256xf32>
    %26 = vector.shape_cast %25 : vector<1x8x256xf32> to vector<8x256xf32>
    %27 = vector.shape_cast %24 : vector<8x256xf32> to vector<1x8x256xf32>
    tpu.vector_store %arg4[%c0_12, %c0_13, %c0_14], %27 {strides = array<i32>} : memref<2x8x256xf32, #tpu.memory_space<vmem>>, vector<1x8x256xf32>,
    %28 = vector.extract_strided_slice %23 {offsets = [0, 256], sizes = [8, 256], strides = [1, 1]} : vector<8x512xf32> to vector<8x256xf32>
    %c1 = arith.constant 1 : index
    %c0_15 = arith.constant 0 : index
    %c0_16 = arith.constant 0 : index
    %29 = vector.load %arg4[%c1, %c0_15, %c0_16] : memref<2x8x256xf32, #tpu.memory_space<vmem>>, vector<1x8x256xf32>
    %30 = vector.shape_cast %29 : vector<1x8x256xf32> to vector<8x256xf32>
    %31 = vector.shape_cast %28 : vector<8x256xf32> to vector<1x8x256xf32>
    tpu.vector_store %arg4[%c1, %c0_15, %c0_16], %31 {strides = array<i32>} : memref<2x8x256xf32, #tpu.memory_space<vmem>>, vector<1x8x256xf32>,
    return
  }
}

</mosaic_0001>

<bundles_post_ra>
// kernel: conv2d_batchnorm.1
= control target key start
LH: loop header
LB: loop body
LE: loop exit
PB: predicated region body
PF: predicated region fallthrough
CT: control target
= control target key end

     0   :  { %vm42_vm0 = vcmask 1043456   ;;  %v263_v3 = vmov 0.0   ;;  %vm38_vm1 = vcmask 293888   ;;  %v264_v42 = vmov 0   ;;  %s375_s1 = inlined_call_operand.vmem [shape: f32[36,512], index: 1, kind: input, shape index: {}]   ;;  %s376_s0 = inlined_call_operand.vmem [shape: f32[8,36], index: 0, kind: input, shape index: {}]   ;;  %s377_s2 = inlined_call_operand.vmem [shape: f32[8,1], index: 2, kind: input, shape index: {}]   ;;  %s378_s3 = inlined_call_operand.vmem [shape: f32[8,1], index: 3, kind: input, shape index: {}]   ;;  %s379_s4 = inlined_call_operand.vmem [shape: f32[2,8,256], index: 4, kind: output, shape index: {}]  }
   0x1   :  { %v35_v0 = vld [vmem:[%s375_s1 + $0x88] sm:$0xf]  ;;  %v34_v1 = vld [vmem:[%s375_s1 + $0x80] sm:$0xf]  ;;  %119 = vmatprep.mubr.f32.mxu0 %v263_v3  ;;  %190 = vmatprep.mubr.f32.mxu1 %v263_v3  ;;  %v37_v4 = vld [vmem:[%s375_s1 + $0x98] sm:$0xf] }
   0x2   :  { %v31_v2 = vld [vmem:[%s375_s1 + $0x68] sm:$0xff]  ;;  %249 = vmatprep.subr.msk.mxu0 %vm42_vm0, %v35_v0  ;;  %v30_v5 = vld [vmem:[%s375_s1 + $0x60] sm:$0xff]  ;;  %v36_v6 = vld [vmem:[%s375_s1 + $0x90] sm:$0xf]  ;;  %252 = vmatprep.subr.msk.mxu1 %vm42_vm0, %v37_v4 }
   0x3   :  { %250 = vmatpush1.msk.msra.mxu0 %vm42_vm0, %v34_v1  ;;  %v27_v7 = vld [vmem:[%s375_s1 + $0x48] sm:$0xff]  ;;  %v33_v8 = vld [vmem:[%s375_s1 + $0x78] sm:$0xff]  ;;  %253 = vmatpush1.msk.msra.mxu1 %vm42_vm0, %v36_v6  ;;  %v26_v9 = vld [vmem:[%s375_s1 + $0x40] sm:$0xff] }
   0x4   :  { %79 = vmatprep.subr.mxu0 %v31_v2  ;;  %v32_v10 = vld [vmem:[%s375_s1 + $0x70] sm:$0xff]  ;;  %v29_v11 = vld [vmem:[%s375_s1 + $0x58] sm:$0xff]  ;;  %150 = vmatprep.subr.mxu1 %v33_v8  ;;  %v23_v12 = vld [vmem:[%s375_s1 + $0x28] sm:$0xff] }
   0x5   :  { %80 = vmatpush1.msra.mxu0 %v30_v5  ;;  %v28_v13 = vld [vmem:[%s375_s1 + $0x50] sm:$0xff]  ;;  %151 = vmatpush1.msra.mxu1 %v32_v10  ;;  %v22_v14 = vld [vmem:[%s375_s1 + $0x20] sm:$0xff]  ;;  %v25_v15 = vld [vmem:[%s375_s1 + $0x38] sm:$0xff] }
   0x6   :  { %81 = vmatprep.subr.mxu0 %v27_v7  ;;  %152 = vmatprep.subr.mxu1 %v29_v11  ;;  %v19_v16 = vld [vmem:[%s375_s1 + $0x8] sm:$0xff]  ;;  %v24_v17 = vld [vmem:[%s375_s1 + $0x30] sm:$0xff]  ;;  %v18_v18 = vld [vmem:[%s375_s1] sm:$0xff] }
   0x7   :  { %82 = vmatpush1.msra.mxu0 %v26_v9  ;;  %153 = vmatpush1.msra.mxu1 %v28_v13  ;;  %v21_v19 = vld [vmem:[%s375_s1 + $0x18] sm:$0xff]  ;;  %v17_v20 = vld [vmem:[%s376_s0] sm:$0xff]  ;;  %v20_v21 = vld [vmem:[%s375_s1 + $0x10] sm:$0xff] }
   0x8   :  { %83 = vmatprep.subr.mxu0 %v23_v12  ;;  %154 = vmatprep.subr.mxu1 %v25_v15  ;;  %v217_v46 = vld [vmem:[%s377_s2] sm:$0xff] }
   0x9   :  { %84 = vmatpush1.msra.mxu0 %v22_v14  ;;  %155 = vmatpush1.msra.mxu1 %v24_v17  ;;  %v230_v49 = vld [vmem:[%s378_s3] sm:$0xff] }
   0xa   :  { %85 = vmatprep.subr.mxu0 %v19_v16  ;;  %156 = vmatprep.subr.mxu1 %v21_v19 }
   0xb   :  { %86 = vmatpush1.msra.mxu0 %v18_v18  ;;  %157 = vmatpush1.msra.mxu1 %v20_v21 }
   0xc   :  { %251 = vmatmul.mubr.msk.f32.vlgmr.msra.gmra.mxu0 %vm38_vm1, %v17_v20  ;;  %254 = vmatmul.mubr.msk.f32.vlgmr.msra.gmra.mxu1 %vm38_vm1, %v17_v20 }
   0xd   :  { %259 = vset.pattern.permute.xlu1 %v264_v42  ;;  %260 = vset.pattern.permute.xlu0 %v264_v42 }
  0xcc   :  { %v121_v22 = vpop.f32.mrf.mxu0  ;;  %v192_v24 = vpop.f32.mrf.mxu1 }
  0xce   :  { %v123_v23 = vpop.f32.mrf.mxu0  ;;  %v194_v27 = vpop.f32.mrf.mxu1 }
  0xcf   :  { %v197_v25 = vadd.f32 %v123_v23, %v121_v22 }
  0xd1   :  { %v198_v26 = vadd.f32 %v197_v25, %v192_v24 }
  0xd3   :  { %v199_v28 = vadd.f32 %v198_v26, %v194_v27 }
  0xd5   :  { %200 = vadd.xlane.f32.xlu0 %v199_v28 }
 0x15e   :  { %v201_v29 = vpop.xlane.xlu0 %200 }
 0x15f   :  { %v202_v30 = vmul.f32 0.001953125, %v201_v29 }
 0x161   :  { %v203_v31 = vsub.f32 %v121_v22, %v202_v30  ;;  %v204_v32 = vsub.f32 %v123_v23, %v202_v30  ;;  %v205_v33 = vsub.f32 %v192_v24, %v202_v30  ;;  %v206_v34 = vsub.f32 %v194_v27, %v202_v30 }
 0x163   :  { %v207_v35 = vmul.f32 %v203_v31, %v203_v31  ;;  %v208_v36 = vmul.f32 %v204_v32, %v204_v32  ;;  %v209_v37 = vmul.f32 %v205_v33, %v205_v33  ;;  %v210_v39 = vmul.f32 %v206_v34, %v206_v34 }
 0x165   :  { %v211_v38 = vadd.f32 %v208_v36, %v207_v35 }
 0x167   :  { %v212_v40 = vadd.f32 %v211_v38, %v209_v37 }
 0x169   :  { %v213_v41 = vadd.f32 %v212_v40, %v210_v39 }
 0x16b   :  { %214 = vadd.xlane.f32.xlu0 %v213_v41 }
 0x1f4   :  { %v215_v43 = vpop.xlane.xlu0 %214 }
 0x1f5   :  { %v216_v44 = vmul.f32 0.001953125, %v215_v43 }
 0x1f7   :  { %v218_v45 = vadd.f32 1e-05, %v216_v44 }
 0x1f9   :  { %261 = vrsqrt.f32 %v218_v45 }
 0x206   :  { %v262_v47 = vpop.eup %261 }
 0x207   :  { %v220_v48 = vmul.f32 %v262_v47, %v217_v46 }
 0x209   :  { %223 = vperm.xlu1 %259, %v220_v48  }
 0x20d   :  { %233 = vperm.xlu1 %259, %v230_v49  }
 0x284   :  { %v224_v50 = vpop.permute.xlu1 %223 }
 0x285   :  { %v226_v51 = vmul.f32 %v224_v50, %v203_v31  ;;  %v227_v52 = vmul.f32 %v224_v50, %v204_v32  ;;  %v228_v53 = vmul.f32 %v224_v50, %v205_v33  ;;  %v229_v54 = vmul.f32 %v224_v50, %v206_v34 }
 0x288   :  { %v234_v55 = vpop.permute.xlu1 %233 }
 0x289   :  { %v236_v56 = vadd.f32 %v234_v55, %v226_v51  ;;  %v237_v57 = vadd.f32 %v234_v55, %v227_v52  ;;  %v238_v58 = vadd.f32 %v234_v55, %v228_v53  ;;  %v239_v59 = vadd.f32 %v234_v55, %v229_v54 }
 0x28b   :  { %240 = vst [vmem:[%s379_s4] sm:$0xff] %v236_v56  ;;  %241 = vst [vmem:[%s379_s4 + $0x8] sm:$0xff] %v237_v57 }
 0x28c   :  { %255 = vst [vmem:[%s379_s4 + $0x10] sm:$0xff] %v238_v58  ;;  %256 = vst [vmem:[%s379_s4 + $0x18] sm:$0xff] %v239_v59 }

</bundles_post_ra>
